<compile_context>
chip_gen: v5e
topology: v5e:2x2
jax: 0.10.0
libtpu: 0.0.40
codegen_flags: <defaults>
</compile_context>

<pallas_src>
import functools
import math

import numpy as np
import jax
import jax.numpy as jnp
from jax.experimental import pallas as pl
from jax.experimental.pallas import tpu as pltpu


# ---------------------------------------------------------------------------
# Hardware / tiling helpers
# ---------------------------------------------------------------------------
def _vmem_capacity_bytes():
    try:
        info = pltpu.get_tpu_info()
        for name in ("vmem_capacity_bytes", "vmem_size_bytes", "vmem_bytes"):
            v = getattr(info, name, None)
            if v:
                return int(v)
    except Exception:
        pass
    return 64 * 1024 * 1024          # conservative default (v7x per-TensorCore VMEM)


def _choose_conv_tile(n_pad, ck, m, target_bytes=8 * 1024 * 1024):
    """Largest N tile (multiple of 128, divides n_pad) under budget, >=2 blocks if possible."""
    per_lane = 2 * (ck * 2 + m * 4)          # dbl-buffered bf16 patch col + f32 out col
    hi = min(n_pad, 4096)
    cands = [t for t in range(128, hi + 1, 128)
             if n_pad % t == 0 and t * per_lane <= target_bytes]
    if not cands:
        return 128
    multi = [t for t in cands if n_pad // t >= 2]
    return max(multi) if multi else max(cands)


def _choose_channel_tile(C, per_ch_bytes, target_bytes):
    """Largest channel tile dividing C under budget; prefer >=2 blocks (v7x megacore)."""
    divs = [d for d in range(1, C + 1) if C % d == 0]
    fits = [d for d in divs if d * per_ch_bytes <= target_bytes] or [1]
    multi = [d for d in fits if C // d >= 2]
    return max(multi) if multi else max(fits)


def _nmode_per_channel_bytes(B, H, W, Wl, Wn, left_itemsize):
    s = B * H * W
    b = 2 * s * 4                    # y input (f32), double buffered
    b += 2 * 2 * s * 4               # y_next + next_left f32 outputs, double buffered
    b += 2 * B * H * Wl * left_itemsize   # left / mid_left input, double buffered
    b += 2 * B * H * Wn * 2          # mid_nleft bf16 input, double buffered
    b += 8 * s * 4                   # in-kernel f32 live temporaries (left, nleft, sigma, ...)
    return b


# ---------------------------------------------------------------------------
# Pallas kernels
# ---------------------------------------------------------------------------
def conv_kernel(w_ref, p_ref, o_ref):
    """Block-diagonal multi-head conv as one MXU matmul over an N (lane) tile.

    w_ref : (Mtot, CKtot)  bf16 block-diag weights (weight_x scalars folded in)
    p_ref : (CKtot, Nt)    bf16 im2col patch tile
    o_ref : (Mtot, Nt)     f32
    """
    o_ref[...] = jnp.dot(w_ref[...], p_ref[...], preferred_element_type=jnp.float32)


def _upsample_w(mid, mwT):
    """Fused W-axis bilinear upsample: (B, ct, H, Wlo) @ (Wlo, W) -> (B, ct, H, W) f32."""
    b, c, h, wlo = mid.shape
    up = jnp.dot(mid.reshape(b * c * h, wlo), mwT, preferred_element_type=jnp.float32)
    return up.reshape(b, c, h, up.shape[-1])


def _nmode_body(scal_ref, y_ref, nleft_ref, mwn_ref, const_ref, ynext_ref,
                nextleft_ref, left, eps):
    """Shared nmODE step.  sigma = BatchNorm(ReLU(.)) with exact batch statistics.

    scal_ref : (2,) SMEM f32 -> [weight_y, delta]
    y_ref / ynext_ref / nextleft_ref : (B, ct, H, W) channel blocks
    nleft_ref : (B, ct, H, Wn) bf16 half-res (H already upsampled), mwn_ref : (Wn, W) bf16
    const_ref : (4, ct, 1, 1) f32 -> [gamma, beta, bias_left, bias_nleft]
    left : (B, ct, H, W) f32 (already fully upsampled / biased)
    """
    wy = scal_ref[0]
    delta = scal_ref[1]

    consts = const_ref[...]                         # single tiny load, hoisted
    gamma, beta, b_nleft = consts[0:1], consts[1:2], consts[3:4]

    nleft = _upsample_w(nleft_ref[...], mwn_ref[...]) + b_nleft
    nextleft_ref[...] = nleft.astype(nextleft_ref.dtype)

    y = y_ref[...].astype(jnp.float32)

    def sigma(z):
        r = jnp.maximum(z, 0.0)
        m = jnp.mean(r, axis=(0, 2, 3), keepdims=True)     # exact batch stats / channel
        d = r - m
        v = jnp.mean(d * d, axis=(0, 2, 3), keepdims=True)  # two-pass variance
        return d * jax.lax.rsqrt(v + eps) * gamma + beta

    wy_y = wy * y
    y_diff = -wy_y + sigma(wy_y + left)
    y_next = (1.0 - 0.5 * delta) * wy_y + (0.5 * delta) * (
        (1.0 - delta) * y_diff + sigma(wy_y + delta * y_diff + nleft))
    ynext_ref[...] = y_next.astype(ynext_ref.dtype)


def nmode_kernel_fused_left(scal_ref, y_ref, midl_ref, mwl_ref, nleft_ref,
                            mwn_ref, const_ref, ynext_ref, nextleft_ref, *, eps):
    """`left is None` path: left is a half-res bf16 mid tensor, upsampled in-kernel."""
    b_left = const_ref[2:3]
    left = _upsample_w(midl_ref[...], mwl_ref[...]) + b_left
    _nmode_body(scal_ref, y_ref, nleft_ref, mwn_ref, const_ref, ynext_ref,
                nextleft_ref, left, eps)


def nmode_kernel_dense_left(scal_ref, y_ref, left_ref, nleft_ref, mwn_ref,
                            const_ref, ynext_ref, nextleft_ref, *, eps):
    """`left` provided full-res by the caller (any dtype, upcast in-kernel)."""
    _nmode_body(scal_ref, y_ref, nleft_ref, mwn_ref, const_ref, ynext_ref,
                nextleft_ref, left_ref[...].astype(jnp.float32), eps)


# ---------------------------------------------------------------------------
# Host-side glue: im2col, separable bilinear matrices, wrappers
# ---------------------------------------------------------------------------
def bilinear_matrix(n_in, n_out):
    """(n_out, n_in) matrix reproducing F.interpolate bilinear, align_corners=False."""
    M = np.zeros((n_out, n_in), dtype=np.float32)
    ratio = n_in / n_out
    for o in range(n_out):
        src = max((o + 0.5) * ratio - 0.5, 0.0)
        i0 = min(int(np.floor(src)), n_in - 1)
        i1 = min(i0 + 1, n_in - 1)
        w1 = src - i0
        M[o, i0] += 1.0 - w1
        M[o, i1] += w1
    return jnp.asarray(M)


def _build_patches(x, kh, kw):
    """im2col: (B, Cin, H, W) -> (Cin*kh*kw, B*Ho*Wo), inner ck order (ci, ky, kx)."""
    B, Cin, H, W = x.shape
    Ho, Wo = H - kh + 1, W - kw + 1
    p = jnp.stack([x[:, :, ky:ky + Ho, kx:kx + Wo]
                   for ky in range(kh) for kx in range(kw)], axis=2)
    p = p.reshape(B, Cin * kh * kw, Ho * Wo)
    p = p.transpose(1, 0, 2).reshape(Cin * kh * kw, B * Ho * Wo)
    return p, Ho, Wo


def conv_heads(xs, ws, wxs):
    """All 3x3 valid convs of the module in ONE block-diagonal MXU matmul.

    xs : list of (B, Cin_i, H, W) (same B, H, W across heads)
    ws : list of (Cout_i, Cin_i, kh, kw)
    wxs: list of python scalars (weight_x_*) folded into the weights host-side.
    Returns list of (Cout_i, B, Ho, Wo) float32 conv outputs (bias NOT added -- it is
    applied in f32 inside the nmODE kernel, which is equivalent after bilinear upsample).
    """
    B, _, H, W = xs[0].shape
    for x in xs[1:]:
        assert x.shape[0] == B and x.shape[2] == H and x.shape[3] == W
    kh, kw = ws[0].shape[2], ws[0].shape[3]
    Ho, Wo = H - kh + 1, W - kw + 1
    N = B * Ho * Wo

    couts = [w.shape[0] for w in ws]
    cks = [w.shape[1] * kh * kw for w in ws]
    Mtot, CKtot = sum(couts), sum(cks)

    # im2col patches concatenated along the contraction dim (no zero-padded P DMA).
    Ps = [_build_patches(x, kh, kw)[0] for x in xs]
    P = jnp.concatenate(Ps, axis=0).astype(jnp.bfloat16)          # (CKtot, N)

    # block-diagonal weights with weight_x scalars folded in (host constant fold)
    Wblk = jnp.zeros((Mtot, CKtot), jnp.float32)
    ro = co = 0
    for w, wx, cout, ck in zip(ws, wxs, couts, cks):
        Wblk = Wblk.at[ro:ro + cout, co:co + ck].set(jnp.float32(wx) * w.reshape(cout, ck))
        ro += cout
        co += ck
    Wblk = Wblk.astype(jnp.bfloat16)

    # lane padding + N tiling (multiple of 128, 'parallel' -> pipelined / both v7x TCs)
    N_pad = ((N + 127) // 128) * 128
    if N_pad != N:
        P = jnp.pad(P, ((0, 0), (0, N_pad - N)))
    nt = _choose_conv_tile(N_pad, CKtot, Mtot)

    cap = _vmem_capacity_bytes()
    out = pl.pallas_call(
        conv_kernel,
        out_shape=jax.ShapeDtypeStruct((Mtot, N_pad), jnp.float32),
        grid=(N_pad // nt,),
        in_specs=[
            pl.BlockSpec((Mtot, CKtot), lambda j: (0, 0)),
            pl.BlockSpec((CKtot, nt), lambda j: (0, j)),
        ],
        out_specs=pl.BlockSpec((Mtot, nt), lambda j: (0, j)),
        compiler_params=pltpu.CompilerParams(
            dimension_semantics=("parallel",),
            vmem_limit_bytes=min(int(cap * 0.5), 48 * 1024 * 1024)),
    )(Wblk, P)

    out = out[:, :N]
    heads, ro = [], 0
    for cout in couts:
        heads.append(out[ro:ro + cout].reshape(cout, B, Ho, Wo))
        ro += cout
    return heads


def _h_upsample_bf16(conv_cbhw, scale):
    """H-axis bilinear upsample in XLA on the LOW-RES conv output; also folds the
    (Cout, B) permutation into the einsum.  Output is bf16 (half-res 'mid' tensor)."""
    _, _, Ho, _ = conv_cbhw.shape
    Hout = int(math.floor(Ho * scale))
    Mh = bilinear_matrix(Ho, Hout)                            # (Hout, Ho)
    mid = jnp.einsum("Hh,cbhw->bcHw", Mh, conv_cbhw)          # (B, Cout, Hout, Wo)
    return mid.astype(jnp.bfloat16)


def _w_upsample_matrix_T(Wo, scale):
    Wout = int(math.floor(Wo * scale))
    return bilinear_matrix(Wo, Wout).T.astype(jnp.bfloat16)   # (Wo, Wout)


def nmode_step(y, left_arg, left_lowres, mwl_T, mid_n, mwn_T, gamma, beta,
               bias_left, bias_nleft, wy, delta, eps=1e-5):
    B, C, H, W = y.shape
    y = y.astype(jnp.float32)
    consts = jnp.stack([gamma, beta, bias_left, bias_nleft]
                       ).astype(jnp.float32).reshape(4, C, 1, 1)
    scalars = jnp.asarray([wy, delta], jnp.float32)

    Hn, Wn = mid_n.shape[2], mid_n.shape[3]
    Hl, Wl = left_arg.shape[2], left_arg.shape[3]
    left_itemsize = 2 if left_lowres else left_arg.dtype.itemsize

    cap = _vmem_capacity_bytes()
    vmem_limit = min(int(cap * 0.625), 80 * 1024 * 1024)      # ~40 MiB on v7x, 80 MiB else
    per_ch = _nmode_per_channel_bytes(B, H, W, Wl, Wn, left_itemsize)
    ct = _choose_channel_tile(C, per_ch, int(vmem_limit * 0.6))

    cmap = lambda c: (0, c, 0, 0)
    in_specs = [pl.BlockSpec(memory_space=pltpu.MemorySpace.SMEM),
                pl.BlockSpec((B, ct, H, W), cmap)]
    args = [scalars, y]
    if left_lowres:
        kernel = functools.partial(nmode_kernel_fused_left, eps=float(eps))
        in_specs += [pl.BlockSpec((B, ct, Hl, Wl), cmap),
                     pl.BlockSpec(mwl_T.shape, lambda c: (0, 0))]
        args += [left_arg, mwl_T]
    else:
        kernel = functools.partial(nmode_kernel_dense_left, eps=float(eps))
        in_specs += [pl.BlockSpec((B, ct, Hl, Wl), cmap)]
        args += [left_arg]
    in_specs += [pl.BlockSpec((B, ct, Hn, Wn), cmap),
                 pl.BlockSpec(mwn_T.shape, lambda c: (0, 0)),
                 pl.BlockSpec((4, ct, 1, 1), cmap)]
    args += [mid_n, mwn_T, consts]

    y_next, next_left = pl.pallas_call(
        kernel,
        out_shape=(jax.ShapeDtypeStruct((B, C, H, W), jnp.float32),
                   jax.ShapeDtypeStruct((B, C, H, W), jnp.float32)),
        grid=(C // ct,),
        in_specs=in_specs,
        out_specs=(pl.BlockSpec((B, ct, H, W), cmap),
                   pl.BlockSpec((B, ct, H, W), cmap)),
        compiler_params=pltpu.CompilerParams(
            dimension_semantics=("parallel",),
            vmem_limit_bytes=vmem_limit),
    )(*args)
    return y_next, next_left


# ---------------------------------------------------------------------------
# C_RB module (parameters + forward)
# ---------------------------------------------------------------------------
def init_crb_params(key, in_channel, in_channel_post, out_channel, ksize=3):
    k1, k2, k3, k4 = jax.random.split(key, 4)
    return dict(
        g_w=0.1 * jax.random.normal(k1, (out_channel, in_channel, ksize, ksize), jnp.float32),
        g_b=0.1 * jax.random.normal(k2, (out_channel,), jnp.float32),
        gpost_w=0.1 * jax.random.normal(k3, (out_channel, in_channel_post, ksize, ksize), jnp.float32),
        gpost_b=0.1 * jax.random.normal(k4, (out_channel,), jnp.float32),
        bn_gamma=jnp.ones((out_channel,), jnp.float32),   # BatchNorm2d default init
        bn_beta=jnp.zeros((out_channel,), jnp.float32),
    )


def c_rb_forward(params, x, x_post, y, delta, weight_x, weight_x_post,
                 weight_y, scale, scale_post, left):
    if left is None:
        conv_l, conv_n = conv_heads(
            [x, x_post], [params["g_w"], params["gpost_w"]],
            [weight_x, weight_x_post])
        left_arg = _h_upsample_bf16(conv_l, scale)                 # (B, C, H, Wo) bf16
        mwl_T = _w_upsample_matrix_T(conv_l.shape[3], scale)
        left_lowres = True
        bias_left = params["g_b"]
    else:
        (conv_n,) = conv_heads([x_post], [params["gpost_w"]], [weight_x_post])
        left_arg = left                                            # full-res, any dtype
        mwl_T = None
        left_lowres = False
        bias_left = jnp.zeros_like(params["gpost_b"])
    mid_n = _h_upsample_bf16(conv_n, scale_post)
    mwn_T = _w_upsample_matrix_T(conv_n.shape[3], scale_post)
    return nmode_step(y, left_arg, left_lowres, mwl_T, mid_n, mwn_T,
                      params["bn_gamma"], params["bn_beta"],
                      bias_left, params["gpost_b"], weight_y, delta)


# ---------------------------------------------------------------------------
# Pure-JAX reference (no Pallas) for a sanity check
# ---------------------------------------------------------------------------
def _ref_conv_interp(x, w, b, w_scale, scale_factor):
    out = jax.lax.conv_general_dilated(
        w_scale * x, w, (1, 1), "VALID",
        dimension_numbers=("NCHW", "OIHW", "NCHW")) + b[None, :, None, None]
    H, W = out.shape[2], out.shape[3]
    Mh = bilinear_matrix(H, int(math.floor(H * scale_factor)))
    Mw = bilinear_matrix(W, int(math.floor(W * scale_factor)))
    return jnp.einsum("oh,pw,bchw->bcop", Mh, Mw, out)


def _ref_sigma(z, gamma, beta, eps=1e-5):
    r = jnp.maximum(z, 0.0)
    mean = r.mean(axis=(0, 2, 3), keepdims=True)
    var = ((r - mean) ** 2).mean(axis=(0, 2, 3), keepdims=True)
    return ((r - mean) / jnp.sqrt(var + eps)) * gamma[None, :, None, None] \
        + beta[None, :, None, None]


def _ref_forward(params, x, x_post, y, delta, wx, wxp, wy, scale, scale_post, left):
    if left is None:
        left = _ref_conv_interp(x, params["g_w"], params["g_b"], wx, scale)
    next_left = _ref_conv_interp(x_post, params["gpost_w"], params["gpost_b"], wxp, scale_post)
    wy_y = wy * y
    y_diff = -wy_y + _ref_sigma(wy_y + left, params["bn_gamma"], params["bn_beta"])
    y_next = (1 - delta / 2) * wy_y + delta / 2 * (
        (1 - delta) * y_diff
        + _ref_sigma(wy_y + delta * y_diff + next_left, params["bn_gamma"], params["bn_beta"]))
    return y_next, next_left


# ---------------------------------------------------------------------------
if __name__ == "__main__":
    B, Cin, Cin_post, Cout = 2, 4, 4, 8
    Hx = Wx = 10                      # 3x3 valid conv -> 8x8, scale 2 -> 16x16
    scale, scale_post = 2, 2
    Hy = Wy = (Hx - 2) * scale
    delta, weight_x, weight_x_post, weight_y = 0.1, 0.7, 0.9, 1.1

    key = jax.random.PRNGKey(0)
    kp, kx, kxp, ky_ = jax.random.split(key, 4)
    params = init_crb_params(kp, Cin, Cin_post, Cout)

    x = jax.random.normal(kx, (B, Cin, Hx, Wx), jnp.float32)
    x_post = jax.random.normal(kxp, (B, Cin_post, Hx, Wx), jnp.float32)
    y = jax.random.normal(ky_, (B, Cout, Hy, Wy), jnp.float32)

    # Step 1: left is None (both conv heads run, left upsample fully fused)
    y1, nl1 = c_rb_forward(params, x, x_post, y, delta, weight_x, weight_x_post,
                           weight_y, scale, scale_post, left=None)
    jax.block_until_ready((y1, nl1))
    y1_ref, nl1_ref = _ref_forward(params, x, x_post, y, delta, weight_x,
                                   weight_x_post, weight_y, scale, scale_post, None)
    assert y1.shape == (B, Cout, Hy, Wy) and nl1.shape == (B, Cout, Hy, Wy)
    assert jnp.allclose(nl1, nl1_ref, rtol=2e-2, atol=2e-2)
    assert jnp.allclose(y1, y1_ref, rtol=2e-2, atol=2e-2)

    # Step 2: chained decoder step exercising the `left is not None` path
    y2, nl2 = c_rb_forward(params, x, x_post, y1, delta, weight_x, weight_x_post,
                           weight_y, scale, scale_post, left=nl1)
    jax.block_until_ready((y2, nl2))
    y2_ref, nl2_ref = _ref_forward(params, x, x_post, y1_ref, delta, weight_x,
                                   weight_x_post, weight_y, scale, scale_post, nl1_ref)
    assert jnp.allclose(nl2, nl2_ref, rtol=2e-2, atol=2e-2)
    assert jnp.allclose(y2, y2_ref, rtol=2e-2, atol=2e-2)

    print("KERNEL_OK")
</pallas_src>

<mosaic_0001>
module attributes {stable_mosaic.version = 11 : i64} {
  func.func @conv_kernel(%arg0: i32, %arg1: memref<16x72xbf16, #tpu.memory_space<vmem>>, %arg2: memref<72x128xbf16, #tpu.memory_space<vmem>>, %arg3: memref<16x128xf32, #tpu.memory_space<vmem>>) attributes {dimension_semantics = [#tpu.dimension_semantics<parallel>], iteration_bounds = array<i64: 1>, scalar_prefetch = 0 : i64, scratch_operands = 0 : i64, tpu.core_type = #tpu.core_type<tc>, window_params = [{pipeline_mode = #tpu.pipeline_mode<synchronous>, transform_indices = @transform_0, window_bounds = array<i64: 16, 72>}, {transform_indices = @transform_1, window_bounds = array<i64: 72, 128>}, {transform_indices = @transform_2, window_bounds = array<i64: 16, 128>}]} {
    %c0 = arith.constant 0 : index
    %c0_0 = arith.constant 0 : index
    %0 = vector.load %arg1[%c0, %c0_0] : memref<16x72xbf16, #tpu.memory_space<vmem>>, vector<16x72xbf16>
    %c0_1 = arith.constant 0 : index
    %c0_2 = arith.constant 0 : index
    %1 = vector.load %arg2[%c0_1, %c0_2] : memref<72x128xbf16, #tpu.memory_space<vmem>>, vector<72x128xbf16>
    %cst = arith.constant dense<0.000000e+00> : vector<16x128xf32>
    %2 = tpu.matmul %0, %1, %cst {dimension_numbers = #tpu.dot_dimension_numbers<[1], [0], [0], [1], [0, 0, 1, 1], [], []>} : vector<16x72xbf16>, vector<72x128xbf16>, vector<16x128xf32> -> vector<16x128xf32>
    %c0_3 = arith.constant 0 : index
    %c0_4 = arith.constant 0 : index
    %3 = vector.load %arg3[%c0_3, %c0_4] : memref<16x128xf32, #tpu.memory_space<vmem>>, vector<16x128xf32>
    tpu.vector_store %arg3[%c0_3, %c0_4], %2 {strides = array<i32>} : memref<16x128xf32, #tpu.memory_space<vmem>>, vector<16x128xf32>,
    return
  }
  func.func @transform_0(%arg0: i32) -> (i32, i32) {
    %c0_i32 = arith.constant 0 : i32
    %c0_i32_0 = arith.constant 0 : i32
    %c0_i32_1 = arith.constant 0 : i32
    return %c0_i32, %c0_i32_0 : i32, i32
  }
  func.func @transform_1(%arg0: i32) -> (i32, i32) {
    %c0_i32 = arith.constant 0 : i32
    %c0_i32_0 = arith.constant 0 : i32
    return %c0_i32, %arg0 : i32, i32
  }
  func.func @transform_2(%arg0: i32) -> (i32, i32) {
    %c0_i32 = arith.constant 0 : i32
    %c0_i32_0 = arith.constant 0 : i32
    return %c0_i32, %arg0 : i32, i32
  }
}

</mosaic_0001>

<bundles_post_ra>
// kernel: tpu_custom_call.1
= control target key start
LH: loop header
LB: loop body
LE: loop exit
PB: predicated region body
PF: predicated region fallthrough
CT: control target
= control target key end

     0   :  { %7 = vsyncpa [#allocation3], 0  ;;  %s274_s0 = inlined_call_operand.hbm [shape: bf16[16,72], index: 0, kind: input, shape index: {}]   ;;  %s275_s1 = inlined_call_operand.hbm [shape: bf16[72,128], index: 1, kind: input, shape index: {}]   ;;  %s276_s2 = inlined_call_operand.hbm [shape: f32[16,128], index: 2, kind: output, shape index: {}]  }
   0x1   :  { %8 = vsyncpa [#allocation6], 0 }
   0x2   :  { %9 = vsyncpa [#allocation4], 0  ;;  %s14_s11 = sshll.u32 %s274_s0, 4  ;;  %s243_s12 = smov [#allocation2]   ;;  %s15_s11 = int_to_ptr.hbm [resolvable:$true] %s14_s11 }
   0x3   :  { %s16_s13 = sshll.u32 %s243_s12, 4  ;;  %s27_s16 = sshll.u32 %s275_s1, 4  ;;  %s17_s13 = int_to_ptr.vmem [resolvable:$true] %s16_s13  ;;  %s28_s16 = int_to_ptr.hbm [resolvable:$true] %s27_s16 }
   0x4   :  { %s244_s17 = smov 64   ;;  %s245_s18 = smov 4  }
   0x5   :  { %22 = dma.hbm_to_vmem [thread:$0]  %s15_s11, 128, %s17_s13, [#allocation3], %s244_s17, %s244_s17, %s245_s18  }
   0x6   :  { %s246_s19 = smov [#allocation5]  }
   0x7   :  { %s29_s20 = sshll.u32 %s246_s19, 4  ;;  %s30_s20 = int_to_ptr.vmem [resolvable:$true] %s29_s20 }
   0x8   :  { %35 = dma.hbm_to_vmem [thread:$0]  %s28_s16, 576, %s30_s20, [#allocation6], %s244_s17, %s244_s17, %s245_s18  }
   0x9   :  { %237 = dma.done.wait [#allocation3], 128  }
   0xa   :  { %238 = vsyncadd [#allocation3], 4294967168 }
   0xb   :  { %239 = dma.done.wait [#allocation6], 576  }
   0xc   :  { %240 = vsyncadd [#allocation6], 4294966720  ;;  %v55_v0 = vld [vmem:[#allocation5 + $0x20] sm:$0xf]  ;;  %vm92_vm0 = vcmask 1043456   ;;  %v157_v4 = vld [vmem:[#allocation5 + $0x18] sm:$0xff] }
   0xd   :  { %v78_v1 = vunpack.c.l.b16 %v55_v0  ;;  %v156_v5 = vld [vmem:[#allocation5 + $0x10] sm:$0xff]  ;;  %v155_v6 = vld [vmem:[#allocation5 + $0x8] sm:$0xff]  ;;  %v154_v7 = vld [vmem:[#allocation5] sm:$0xff]  ;;  %vm88_vm1 = vcmask 588800   ;;  %s247_s0 = smov [#allocation7]   ;;  %s118_s23 = sshll.u32 %s276_s2, 4  ;;  %s119_s23 = int_to_ptr.hbm [resolvable:$true] %s118_s23 }
   0xe   :  { %v153_v8 = vld [vmem:[#allocation2] sm:$0xff]  ;;  %s116_s1 = sshll.u32 %s247_s0, 4  ;;  %s248_s24 = smov 128   ;;  %s117_s1 = int_to_ptr.vmem [resolvable:$true] %s116_s1 }
   0xf   :  { %v83_v2 = vpack.c.b16 %v78_v1, %v78_v1  ;;  %s249_s25 = smov 8  }
  0x11   :  { %v94_v3 = vsel %vm92_vm0, %v83_v2, 0 }
  0x12   :  { %99 = vmatpush.bf16.msra.mxu0 %v94_v3 }
  0x16   :  { %100 = vmatpush.bf16.msra.mxu0 %v157_v4 }
  0x1a   :  { %101 = vmatpush.bf16.msra.mxu0 %v156_v5 }
  0x1e   :  { %102 = vmatpush.bf16.msra.mxu0 %v155_v6 }
  0x22   :  { %103 = vmatpush.bf16.msra.mxu0 %v154_v7 }
  0x25   :  { %152 = vmatmul.msk.bf16.vlgmr.msra.gmra.mxu0 %vm88_vm1, %v153_v8 }
  0xa2   :  { %v105_v9 = vpop.f32.mrf.mxu0 }
  0xa3   :  { %110 = vst [vmem:[#allocation7] sm:$0xff] %v105_v9 }
  0xaa   :  { %v107_v10 = vpop.f32.mrf.mxu0 }
  0xab   :  { %111 = vst [vmem:[#allocation7 + $0x8] sm:$0xff] %v107_v10 }
  0xac   :  { %124 = dma.vmem_to_hbm [thread:$0]  %s117_s1, 256, %s119_s23, [#allocation4], %s248_s24, %s248_s24, %s249_s25  }
  0xad   :  { %241 = dma.done.wait [#allocation4], 256  }
  0xae   :  { %242 = vsyncadd [#allocation4], 4294967040 }
  0xaf   :  { %129 = vsyncpa [#allocation3], 1 }
  0xb0   :  { %130 = vsyncpa [#allocation6], 1 }
  0xb1   :  { %131 = vsyncpa [#allocation4], 1 }

</bundles_post_ra>
